<compile_context>
chip_gen: v6e
topology: v6e:2x2x1
jax: 0.10.0
libtpu: 0.0.40
codegen_flags: <defaults>
</compile_context>

<pallas_src>
import math

import jax
import jax.numpy as jnp
from jax.experimental import pallas as pl
from jax.experimental.pallas import tpu as pltpu


def _copy_kernel(x_ref, o_ref):
    # Identity copy of one (row_tile, lane) block.
    o_ref[...] = x_ref[...]


def _pytorch_flatten_shape(shape, start_dim, end_dim):
    """Reproduce Flatten.forward's new_shape computation exactly."""
    ndim = len(shape)
    end = end_dim if end_dim >= 0 else ndim + end_dim
    flattened = math.prod(shape[start_dim:end]) * shape[end]
    first_dims = list(shape[:start_dim])
    last_dims = list(shape[end + 1:]) if end_dim != -1 else []
    return tuple(first_dims + [flattened] + last_dims)


_LANE_CANDIDATES = (2048, 1024, 512, 256, 128)
# ~2 MiB per block: x2 buffers per operand (in + out, double-buffered) = ~8 MiB
# resident, safely under default scoped VMEM on every generation (incl. v7x).
_TARGET_BLOCK_BYTES = 2 * 1024 * 1024


def _pick_lane_width(total):
    """Largest lane width (multiple of 128, <= 2048) that divides `total`."""
    for cand in _LANE_CANDIDATES:
        if total % cand == 0:
            return cand
    return None


def _pick_row_tile(rows, lane, itemsize):
    """Largest row tile (multiple of 8, or the full extent) s.t. block ~<= 2 MiB."""
    max_rows = max(1, _TARGET_BLOCK_BYTES // (lane * itemsize))
    if rows <= max_rows:
        return rows  # full-extent block dim is always legal
    best = None
    for d in range(8, max_rows + 1, 8):  # f32 sublane multiple
        if rows % d == 0:
            best = d
    return best if best is not None else rows


def pallas_flatten(x, start_dim=1, end_dim=-1):
    new_shape = _pytorch_flatten_shape(x.shape, start_dim, end_dim)
    total = math.prod(x.shape) if x.ndim > 0 else 1
    itemsize = jnp.dtype(x.dtype).itemsize

    lane = _pick_lane_width(total)
    if lane is not None:
        rows = total // lane
        row_tile = _pick_row_tile(rows, lane, itemsize)
        grid = (rows // row_tile,)
        block = (row_tile, lane)
        index_map = lambda i: (i, 0)
    else:
        # TODO(synk): total not a multiple of 128 -> single full-extent block
        # (masked partial stores); fine for small tensors, pad for huge ones.
        rows, lane = 1, total
        grid = (1,)
        block = (1, total)
        index_map = lambda i: (0, 0)

    # Glue reshape to the 2-D (rows, lane) view; the copy happens in-kernel.
    x2d = jnp.reshape(x, (rows, lane))

    out2d = pl.pallas_call(
        _copy_kernel,
        out_shape=jax.ShapeDtypeStruct((rows, lane), x.dtype),
        grid_spec=pltpu.PrefetchScalarGridSpec(
            num_scalar_prefetch=0,
            grid=grid,
            in_specs=[pl.BlockSpec(block, index_map)],
            out_specs=pl.BlockSpec(block, index_map),
        ),
        compiler_params=pltpu.CompilerParams(
            dimension_semantics=("parallel",),
        ),
        cost_estimate=pl.CostEstimate(
            flops=0,
            transcendentals=0,
            bytes_accessed=2 * total * itemsize,
        ),
    )(x2d)

    return jnp.reshape(out2d, new_shape)


if __name__ == "__main__":
    key = jax.random.PRNGKey(0)

    # 1) Small NCHW input (default start_dim=1, end_dim=-1), 128-aligned path.
    x = jax.random.normal(key, (2, 4, 16, 16), dtype=jnp.float32)
    y = pallas_flatten(x, start_dim=1, end_dim=-1)
    y = jax.block_until_ready(y)
    y_ref = jnp.reshape(x, (2, 4 * 16 * 16))
    assert y.shape == (2, 1024), y.shape
    assert jnp.array_equal(y, y_ref), "mismatch vs reference flatten (NCHW)"

    # 2) ResNet-head-like shape (N, C, 1, 1) -> (N, C).
    x2 = jax.random.normal(jax.random.PRNGKey(0), (4, 512, 1, 1), dtype=jnp.float32)
    y2 = jax.block_until_ready(pallas_flatten(x2))
    assert y2.shape == (4, 512)
    assert jnp.array_equal(y2, jnp.reshape(x2, (4, 512)))

    # 3) General start_dim (exercises the non-128-divisible fallback path).
    x3 = jax.random.normal(jax.random.PRNGKey(0), (2, 3, 4, 8), dtype=jnp.float32)
    y3 = jax.block_until_ready(pallas_flatten(x3, start_dim=2, end_dim=-1))
    assert y3.shape == (2, 3, 32), y3.shape
    assert jnp.array_equal(y3, jnp.reshape(x3, (2, 3, 32)))

    print("KERNEL_OK")
</pallas_src>

<mosaic_0001>
module attributes {stable_mosaic.version = 11 : i64} {
  func.func @_copy_kernel(%arg0: i32, %arg1: memref<1x2048xf32, #tpu.memory_space<vmem>>, %arg2: memref<1x2048xf32, #tpu.memory_space<vmem>>) attributes {dimension_semantics = [#tpu.dimension_semantics<parallel>], iteration_bounds = array<i64: 1>, scalar_prefetch = 0 : i64, scratch_operands = 0 : i64, tpu.core_type = #tpu.core_type<tc>, window_params = [{transform_indices = @transform_0, window_bounds = array<i64: 1, 2048>}, {transform_indices = @transform_1, window_bounds = array<i64: 1, 2048>}]} {
    %c0 = arith.constant 0 : index
    %c0_0 = arith.constant 0 : index
    %0 = vector.load %arg1[%c0, %c0_0] : memref<1x2048xf32, #tpu.memory_space<vmem>>, vector<1x2048xf32>
    %c0_1 = arith.constant 0 : index
    %c0_2 = arith.constant 0 : index
    %1 = vector.load %arg2[%c0_1, %c0_2] : memref<1x2048xf32, #tpu.memory_space<vmem>>, vector<1x2048xf32>
    tpu.vector_store %arg2[%c0_1, %c0_2], %0 {strides = array<i32>} : memref<1x2048xf32, #tpu.memory_space<vmem>>, vector<1x2048xf32>,
    return
  }
  func.func @transform_0(%arg0: i32) -> (i32, i32) {
    %c0_i32 = arith.constant 0 : i32
    %c0_i32_0 = arith.constant 0 : i32
    return %arg0, %c0_i32 : i32, i32
  }
  func.func @transform_1(%arg0: i32) -> (i32, i32) {
    %c0_i32 = arith.constant 0 : i32
    %c0_i32_0 = arith.constant 0 : i32
    return %arg0, %c0_i32 : i32, i32
  }
}

</mosaic_0001>

<bundles_post_ra>
// kernel: tpu_custom_call.1
= control target key start
LH: loop header
LB: loop body
LE: loop exit
PB: predicated region body
PF: predicated region fallthrough
CT: control target
= control target key end

     0   :  { %6 = vsyncpa [#allocation3], 0  ;;  %s104_s0 = inlined_call_operand.hbm [shape: f32[1,2048], index: 0, kind: input, shape index: {}]   ;;  %s105_s1 = inlined_call_operand.hbm [shape: f32[1,2048], index: 1, kind: output, shape index: {}]  }
   0x1   :  { %7 = vsyncpa [#allocation4], 0  ;;  %s86_s6 = smov [#allocation2]  }
   0x2   :  { %s14_s7 = sshll.u32 %s86_s6, 4  ;;  %s15_s7 = int_to_ptr.vmem [resolvable:$true] %s14_s7 }
   0x3   :  { %s50_s8 = scalar_lea.vmem %s15_s7, 256  ;;  %p55_p1 = scmp.lt.s32.totalorder %s15_s7, %s15_s7 }
   0x4   :  { %p51_p0 = scmp.ne.s32.totalorder %s15_s7, %s50_s8  ;;  %p56_p2 = scmp.lt.s32.totalorder %s50_s8, %s50_s8 }
   0x6   :  { %p57_p3 = por %p56_p2, %p55_p1 }
   0x8   :  { %p58_p4 = pnand %p57_p3, %p51_p0 }
   0xa   :  { %61 = shalt.err (!%p58_p4)
}
   0xb   :  { %17 = dma.hbm_to_vmem [thread:$0]  %s104_s0, 256, %s15_s7, [#allocation3]  }
   0xc   :  { %82 = dma.done.wait [#allocation3], 256  }
   0xd   :  { %83 = vsyncadd [#allocation3], 4294967040  ;;  %s87_s11 = smov [#allocation5]   ;;  %v21_v0 = vld [vmem:[#allocation2] sm:$0xff]  ;;  %v22_v1 = vld [vmem:[#allocation2 + $0x8] sm:$0xff] }
   0xe   :  { %s31_s12 = sshll.u32 %s87_s11, 4  ;;  %23 = vst [vmem:[#allocation5] sm:$0xff] %v21_v0  ;;  %24 = vst [vmem:[#allocation5 + $0x8] sm:$0xff] %v22_v1  ;;  %s32_s12 = int_to_ptr.vmem [resolvable:$true] %s31_s12 }
   0xf   :  { %s62_s13 = scalar_lea.vmem %s32_s12, 256  ;;  %p67_p6 = scmp.lt.s32.totalorder %s32_s12, %s32_s12 }
  0x10   :  { %p63_p5 = scmp.ne.s32.totalorder %s32_s12, %s62_s13  ;;  %p68_p7 = scmp.lt.s32.totalorder %s62_s13, %s62_s13 }
  0x12   :  { %p69_p8 = por %p68_p7, %p67_p6 }
  0x14   :  { %p70_p9 = pnand %p69_p8, %p63_p5 }
  0x16   :  { %73 = shalt.err (!%p70_p9)
}
  0x17   :  { %34 = dma.vmem_to_hbm [thread:$0]  %s32_s12, 256, %s105_s1, [#allocation4]  }
  0x18   :  { %84 = dma.done.wait [#allocation4], 256  }
  0x19   :  { %85 = vsyncadd [#allocation4], 4294967040 }
  0x1a   :  { %38 = vsyncpa [#allocation3], 1 }
  0x1b   :  { %39 = vsyncpa [#allocation4], 1 }

</bundles_post_ra>
